<compile_context>
chip_gen: v7x
topology: tpu7x:2x2x1
jax: 0.10.0
libtpu: 0.0.40
codegen_flags: <defaults>
</compile_context>

<pallas_src>
import jax
import jax.numpy as jnp
from jax.experimental import pallas as pl
from jax.experimental.pallas import tpu as pltpu


def _self_attention_kernel(gamma_ref, w_ref, xq_ref, xk_ref, o_ref,
                           qw_sc, m_sc, l_sc, acc_sc):
    # gamma_ref : SMEM (1, 1) f32 scalar parameter
    # w_ref     : VMEM (C, C)      folded bilinear weight  w1^T @ w2
    # xq_ref    : VMEM (B, TQ, C)  time-major features, query-time tile
    # xk_ref    : VMEM (B, TK, C)  time-major features, key-time tile
    # o_ref     : VMEM (B, TQ, C)  time-major output tile
    # qw_sc     : VMEM (B, TQ, C)  cached  xq @ W  for the current query tile
    # m_sc/l_sc : VMEM (B, TQ, 1)  online-softmax running max / denominator
    # acc_sc    : VMEM (B, TQ, C)  online-softmax accumulated attention output
    ki = pl.program_id(1)
    nk = pl.num_programs(1)

    @pl.when(ki == 0)
    def _init():
        q = xq_ref[...]                                            # (B, TQ, C)
        b = q.shape[0]
        wb = jnp.broadcast_to(w_ref[...][None, :, :], (b,) + w_ref.shape)
        # qw[b,t,d] = sum_c q[b,t,c] * W[c,d]   (computed once per query tile)
        qw_sc[...] = jax.lax.dot_general(
            q, wb, dimension_numbers=(((2,), (1,)), ((0,), (0,))),
            preferred_element_type=jnp.float32)
        m_sc[...] = jnp.full_like(m_sc, -jnp.inf)
        l_sc[...] = jnp.zeros_like(l_sc)
        acc_sc[...] = jnp.zeros_like(acc_sc)

    k = xk_ref[...]                                                # (B, TK, C)
    # scores s[b,t,j] = sum_d qw[b,t,d] * k[b,j,d]  -- transposed operand handled by
    # the MXU via dot_general dimension numbers (no XLU transpose).
    s = jax.lax.dot_general(
        qw_sc[...], k, dimension_numbers=(((2,), (2,)), ((0,), (0,))),
        preferred_element_type=jnp.float32)                        # (B, TQ, TK)

    m_prev = m_sc[...]
    m_new = jnp.maximum(m_prev, jnp.max(s, axis=-1, keepdims=True))
    alpha = jnp.exp(m_prev - m_new)
    p = jnp.exp(s - m_new)                                         # (B, TQ, TK)
    l_sc[...] = alpha * l_sc[...] + jnp.sum(p, axis=-1, keepdims=True)
    # pv[b,t,c] = sum_j p[b,t,j] * k[b,j,c]
    pv = jax.lax.dot_general(
        p, k, dimension_numbers=(((2,), (1,)), ((0,), (0,))),
        preferred_element_type=jnp.float32)                        # (B, TQ, C)
    acc_sc[...] = alpha * acc_sc[...] + pv
    m_sc[...] = m_new

    @pl.when(ki == nk - 1)
    def _finalize():
        l = l_sc[...]
        inv = pl.reciprocal(l, approx=True)      # EUP slot (nearly free)
        inv = inv * (2.0 - l * inv)              # one Newton step -> ~f32-exact
        gamma = gamma_ref[0, 0]
        o_ref[...] = (xq_ref[...] + gamma * (acc_sc[...] * inv)).astype(o_ref.dtype)


def _pick_time_tile(t, target):
    """Largest tile <= target that evenly divides t (falls back to t itself)."""
    if t <= target:
        return t
    tile = target
    while tile >= 8:
        if t % tile == 0:
            return tile
        tile -= 8
    return t


def self_attention_forward(x_nchw, w1, w2, gamma, *, tq=None, tk=None):
    """x_nchw: (B, C, 1, T) f32; w1, w2: (K, C) 1x1-conv weights; gamma: (1, 1)."""
    B, C, H, T = x_nchw.shape
    assert H == 1, "module squeezes dim 2; H must be 1"

    # Time-major layout for the kernel: channels on the lane axis, time on sublanes.
    x_t = jnp.transpose(x_nchw.reshape(B, C, T), (0, 2, 1))        # (B, T, C)

    # Fold the two bias-free 1x1 convs into one bilinear form (weight-only prep):
    #   S = (w1 x)^T (w2 x) = x^T (w1^T w2) x
    w_fold = jnp.einsum("kc,kd->cd", w1, w2,
                        precision=jax.lax.Precision.HIGHEST)       # (C, C)

    # Whole T in a single tile when small (-> one grid step for the entire batch);
    # 256-aligned flash tiles otherwise.
    # TODO(synk): on v7x (64 MiB VMEM) halve these targets if B*C makes tiles large.
    tq = _pick_time_tile(T, 256) if tq is None else tq
    tk = _pick_time_tile(T, 256) if tk is None else tk
    nq, nk = T // tq, T // tk

    gamma = jnp.asarray(gamma, jnp.float32).reshape(1, 1)

    out_t = pl.pallas_call(
        _self_attention_kernel,
        out_shape=jax.ShapeDtypeStruct((B, T, C), x_t.dtype),
        grid_spec=pltpu.PrefetchScalarGridSpec(
            num_scalar_prefetch=0,
            grid=(nq, nk),
            in_specs=[
                pl.BlockSpec(memory_space=pltpu.MemorySpace.SMEM),      # gamma (1,1)
                pl.BlockSpec((C, C), lambda qi, ki: (0, 0)),            # folded weight
                pl.BlockSpec((B, tq, C), lambda qi, ki: (0, qi, 0)),    # query-time tile
                pl.BlockSpec((B, tk, C), lambda qi, ki: (0, ki, 0)),    # key-time tile
            ],
            out_specs=pl.BlockSpec((B, tq, C), lambda qi, ki: (0, qi, 0)),
            scratch_shapes=[
                pltpu.VMEM((B, tq, C), jnp.float32),   # cached xq @ W
                pltpu.VMEM((B, tq, 1), jnp.float32),   # running max
                pltpu.VMEM((B, tq, 1), jnp.float32),   # running denominator
                pltpu.VMEM((B, tq, C), jnp.float32),   # accumulated attention output
            ],
        ),
        compiler_params=pltpu.CompilerParams(
            dimension_semantics=("parallel", "arbitrary"),
            vmem_limit_bytes=32 * 1024 * 1024,
        ),
    )(gamma, w_fold, x_t, x_t)

    # Back to NCHW (B, C, 1, T).
    return jnp.transpose(out_t, (0, 2, 1)).reshape(B, C, 1, T)


def _reference_forward(x_nchw, w1, w2, gamma):
    """Pure-JAX reference matching the PyTorch forward (high-precision einsums)."""
    B, C, H, T = x_nchw.shape
    hp = jax.lax.Precision.HIGHEST
    temp = x_nchw.reshape(B, C, T)
    f1 = jnp.einsum("kc,bct->bkt", w1, temp, precision=hp)
    f2 = jnp.einsum("kc,bct->bkt", w2, temp, precision=hp)
    s = jnp.einsum("bkt,bkj->btj", f1, f2, precision=hp)
    a = jax.nn.softmax(s, axis=-1)
    out = jnp.einsum("bcj,btj->bct", temp, a, precision=hp)
    out = temp + gamma[0, 0] * out
    return out.reshape(B, C, 1, T)


if __name__ == "__main__":
    key = jax.random.PRNGKey(0)
    k_x, k_w1, k_w2 = jax.random.split(key, 3)

    B, C, T = 2, 4, 16          # batch, inplanes, time (H = 1)
    K = 64                       # transform_planes (module default)

    x = jax.random.normal(k_x, (B, C, 1, T), dtype=jnp.float32)
    # Deterministic synthetic 1x1-conv weights (kernel_size=(1,1), bias=False).
    w1 = jax.random.normal(k_w1, (K, C), dtype=jnp.float32) * (1.0 / jnp.sqrt(C))
    w2 = jax.random.normal(k_w2, (K, C), dtype=jnp.float32) * (1.0 / jnp.sqrt(C))
    gamma = jnp.ones((1, 1), dtype=jnp.float32)   # nn.init.ones_

    # TODO(synk): randomAblate / maxAbalate / word_maxAblate / weightedDropout are
    # host-side numpy masking utilities never invoked in forward(); `ranges` is unused
    # by the forward compute; not implemented.

    out = self_attention_forward(x, w1, w2, gamma)
    out = jax.block_until_ready(out)

    ref = _reference_forward(x, w1, w2, gamma)
    assert out.shape == (B, C, 1, T)
    # Tolerance covers pure f32 re-association from folding w1^T w2 (mathematically
    # exact rewrite); observed deviation is ~1e-5.
    assert jnp.allclose(out, ref, atol=2e-4, rtol=2e-4), "mismatch vs. reference"

    print("KERNEL_OK")
</pallas_src>

<mosaic_0001>
module attributes {stable_mosaic.version = 11 : i64} {
  func.func @_self_attention_kernel(%arg0: i32, %arg1: i32, %arg2: memref<1x1xf32, #tpu.memory_space<smem>>, %arg3: memref<4x4xf32, #tpu.memory_space<vmem>>, %arg4: memref<2x16x4xf32, #tpu.memory_space<vmem>>, %arg5: memref<2x16x4xf32, #tpu.memory_space<vmem>>, %arg6: memref<2x16x4xf32, #tpu.memory_space<vmem>>, %arg7: memref<2x16x4xf32, #tpu.memory_space<vmem>>, %arg8: memref<2x16x1xf32, #tpu.memory_space<vmem>>, %arg9: memref<2x16x1xf32, #tpu.memory_space<vmem>>, %arg10: memref<2x16x4xf32, #tpu.memory_space<vmem>>) attributes {dimension_semantics = [#tpu.dimension_semantics<parallel>, #tpu.dimension_semantics<arbitrary>], iteration_bounds = array<i64: 1, 1>, scalar_prefetch = 0 : i64, scratch_operands = 4 : i64, tpu.core_type = #tpu.core_type<tc>, window_params = [{transform_indices = @transform_0, window_bounds = array<i64: 1, 1>}, {pipeline_mode = #tpu.pipeline_mode<synchronous>, transform_indices = @transform_1, window_bounds = array<i64: 4, 4>}, {transform_indices = @transform_2, window_bounds = array<i64: 2, 16, 4>}, {transform_indices = @transform_3, window_bounds = array<i64: 2, 16, 4>}, {transform_indices = @transform_4, window_bounds = array<i64: 2, 16, 4>}]} {
    %c0_i32 = arith.constant 0 : i32
    %0 = arith.cmpi eq, %arg1, %c0_i32 : i32
    %1 = arith.extui %0 : i1 to i32
    %c0_i32_0 = arith.constant 0 : i32
    %2 = arith.cmpi ne, %1, %c0_i32_0 : i32
    scf.if %2 {
      %c0_29 = arith.constant 0 : index
      %c0_30 = arith.constant 0 : index
      %c0_31 = arith.constant 0 : index
      %31 = vector.load %arg4[%c0_29, %c0_30, %c0_31] : memref<2x16x4xf32, #tpu.memory_space<vmem>>, vector<2x16x4xf32>
      %c0_32 = arith.constant 0 : index
      %c0_33 = arith.constant 0 : index
      %32 = vector.load %arg3[%c0_32, %c0_33] : memref<4x4xf32, #tpu.memory_space<vmem>>, vector<4x4xf32>
      %33 = vector.shape_cast %32 : vector<4x4xf32> to vector<1x4x4xf32>
      %34 = vector.shape_cast %33 : vector<1x4x4xf32> to vector<1x4x4xf32>
      %35 = vector.broadcast %34 : vector<1x4x4xf32> to vector<2x4x4xf32>
      %cst_34 = arith.constant dense<0.000000e+00> : vector<2x16x4xf32>
      %36 = tpu.matmul %31, %35, %cst_34 {dimension_numbers = #tpu.dot_dimension_numbers<[2], [1], [1], [2], [0, 0, 0, 1, 1, 2], [0], [0]>} : vector<2x16x4xf32>, vector<2x4x4xf32>, vector<2x16x4xf32> -> vector<2x16x4xf32>
      %c0_35 = arith.constant 0 : index
      %c0_36 = arith.constant 0 : index
      %c0_37 = arith.constant 0 : index
      %37 = vector.load %arg7[%c0_35, %c0_36, %c0_37] : memref<2x16x4xf32, #tpu.memory_space<vmem>>, vector<2x16x4xf32>
      tpu.vector_store %arg7[%c0_35, %c0_36, %c0_37], %36 {strides = array<i32>} : memref<2x16x4xf32, #tpu.memory_space<vmem>>, vector<2x16x4xf32>,
      %cst_38 = arith.constant 0xFF800000 : f32
      %38 = vector.broadcast %cst_38 : f32 to vector<2x16x1xf32>
      %c0_39 = arith.constant 0 : index
      %c0_40 = arith.constant 0 : index
      %c0_41 = arith.constant 0 : index
      %39 = vector.load %arg8[%c0_39, %c0_40, %c0_41] : memref<2x16x1xf32, #tpu.memory_space<vmem>>, vector<2x16x1xf32>
      tpu.vector_store %arg8[%c0_39, %c0_40, %c0_41], %38 {strides = array<i32>} : memref<2x16x1xf32, #tpu.memory_space<vmem>>, vector<2x16x1xf32>,
      %cst_42 = arith.constant 0.000000e+00 : f32
      %40 = vector.broadcast %cst_42 : f32 to vector<2x16x1xf32>
      %c0_43 = arith.constant 0 : index
      %c0_44 = arith.constant 0 : index
      %c0_45 = arith.constant 0 : index
      %41 = vector.load %arg9[%c0_43, %c0_44, %c0_45] : memref<2x16x1xf32, #tpu.memory_space<vmem>>, vector<2x16x1xf32>
      tpu.vector_store %arg9[%c0_43, %c0_44, %c0_45], %40 {strides = array<i32>} : memref<2x16x1xf32, #tpu.memory_space<vmem>>, vector<2x16x1xf32>,
      %cst_46 = arith.constant 0.000000e+00 : f32
      %42 = vector.broadcast %cst_46 : f32 to vector<2x16x4xf32>
      %c0_47 = arith.constant 0 : index
      %c0_48 = arith.constant 0 : index
      %c0_49 = arith.constant 0 : index
      %43 = vector.load %arg10[%c0_47, %c0_48, %c0_49] : memref<2x16x4xf32, #tpu.memory_space<vmem>>, vector<2x16x4xf32>
      tpu.vector_store %arg10[%c0_47, %c0_48, %c0_49], %42 {strides = array<i32>} : memref<2x16x4xf32, #tpu.memory_space<vmem>>, vector<2x16x4xf32>,
    } else {
    }
    %c0 = arith.constant 0 : index
    %c0_1 = arith.constant 0 : index
    %c0_2 = arith.constant 0 : index
    %3 = vector.load %arg5[%c0, %c0_1, %c0_2] : memref<2x16x4xf32, #tpu.memory_space<vmem>>, vector<2x16x4xf32>
    %c0_3 = arith.constant 0 : index
    %c0_4 = arith.constant 0 : index
    %c0_5 = arith.constant 0 : index
    %4 = vector.load %arg7[%c0_3, %c0_4, %c0_5] : memref<2x16x4xf32, #tpu.memory_space<vmem>>, vector<2x16x4xf32>
    %cst = arith.constant dense<0.000000e+00> : vector<2x16x16xf32>
    %5 = tpu.matmul %4, %3, %cst {dimension_numbers = #tpu.dot_dimension_numbers<[2], [2], [1], [1], [0, 0, 0, 1, 1, 1], [0], [0]>} : vector<2x16x4xf32>, vector<2x16x4xf32>, vector<2x16x16xf32> -> vector<2x16x16xf32>
    %c0_6 = arith.constant 0 : index
    %c0_7 = arith.constant 0 : index
    %c0_8 = arith.constant 0 : index
    %6 = vector.load %arg8[%c0_6, %c0_7, %c0_8] : memref<2x16x1xf32, #tpu.memory_space<vmem>>, vector<2x16x1xf32>
    %cst_9 = arith.constant dense<0xFF800000> : vector<2x16xf32>
    %7 = vector.multi_reduction <maximumf>, %5, %cst_9 [2] : vector<2x16x16xf32> to vector<2x16xf32>
    %8 = vector.shape_cast %7 : vector<2x16xf32> to vector<2x16x1xf32>
    %9 = arith.maximumf %6, %8 : vector<2x16x1xf32>
    %10 = arith.subf %6, %9 : vector<2x16x1xf32>
    %11 = math.exp %10 : vector<2x16x1xf32>
    %12 = vector.broadcast %9 : vector<2x16x1xf32> to vector<2x16x16xf32>
    %13 = arith.subf %5, %12 : vector<2x16x16xf32>
    %14 = math.exp %13 : vector<2x16x16xf32>
    %c0_10 = arith.constant 0 : index
    %c0_11 = arith.constant 0 : index
    %c0_12 = arith.constant 0 : index
    %15 = vector.load %arg9[%c0_10, %c0_11, %c0_12] : memref<2x16x1xf32, #tpu.memory_space<vmem>>, vector<2x16x1xf32>
    %16 = arith.mulf %11, %15 : vector<2x16x1xf32>
    %cst_13 = arith.constant dense<0.000000e+00> : vector<2x16xf32>
    %17 = vector.multi_reduction <add>, %14, %cst_13 [2] : vector<2x16x16xf32> to vector<2x16xf32>
    %18 = vector.shape_cast %17 : vector<2x16xf32> to vector<2x16x1xf32>
    %19 = arith.addf %16, %18 : vector<2x16x1xf32>
    %c0_14 = arith.constant 0 : index
    %c0_15 = arith.constant 0 : index
    %c0_16 = arith.constant 0 : index
    %20 = vector.load %arg9[%c0_14, %c0_15, %c0_16] : memref<2x16x1xf32, #tpu.memory_space<vmem>>, vector<2x16x1xf32>
    tpu.vector_store %arg9[%c0_14, %c0_15, %c0_16], %19 {strides = array<i32>} : memref<2x16x1xf32, #tpu.memory_space<vmem>>, vector<2x16x1xf32>,
    %cst_17 = arith.constant dense<0.000000e+00> : vector<2x16x4xf32>
    %21 = tpu.matmul %14, %3, %cst_17 {dimension_numbers = #tpu.dot_dimension_numbers<[2], [1], [1], [2], [0, 0, 0, 1, 1, 2], [0], [0]>} : vector<2x16x16xf32>, vector<2x16x4xf32>, vector<2x16x4xf32> -> vector<2x16x4xf32>
    %c0_18 = arith.constant 0 : index
    %c0_19 = arith.constant 0 : index
    %c0_20 = arith.constant 0 : index
    %22 = vector.load %arg10[%c0_18, %c0_19, %c0_20] : memref<2x16x4xf32, #tpu.memory_space<vmem>>, vector<2x16x4xf32>
    %23 = vector.broadcast %11 : vector<2x16x1xf32> to vector<2x16x4xf32>
    %24 = arith.mulf %23, %22 : vector<2x16x4xf32>
    %25 = arith.addf %24, %21 : vector<2x16x4xf32>
    %c0_21 = arith.constant 0 : index
    %c0_22 = arith.constant 0 : index
    %c0_23 = arith.constant 0 : index
    %26 = vector.load %arg10[%c0_21, %c0_22, %c0_23] : memref<2x16x4xf32, #tpu.memory_space<vmem>>, vector<2x16x4xf32>
    tpu.vector_store %arg10[%c0_21, %c0_22, %c0_23], %25 {strides = array<i32>} : memref<2x16x4xf32, #tpu.memory_space<vmem>>, vector<2x16x4xf32>,
    %c0_24 = arith.constant 0 : index
    %c0_25 = arith.constant 0 : index
    %c0_26 = arith.constant 0 : index
    %27 = vector.load %arg8[%c0_24, %c0_25, %c0_26] : memref<2x16x1xf32, #tpu.memory_space<vmem>>, vector<2x16x1xf32>
    tpu.vector_store %arg8[%c0_24, %c0_25, %c0_26], %9 {strides = array<i32>} : memref<2x16x1xf32, #tpu.memory_space<vmem>>, vector<2x16x1xf32>,
    %c0_i32_27 = arith.constant 0 : i32
    %28 = arith.cmpi eq, %arg1, %c0_i32_27 : i32
    %29 = arith.extui %28 : i1 to i32
    %c0_i32_28 = arith.constant 0 : i32
    %30 = arith.cmpi ne, %29, %c0_i32_28 : i32
    scf.if %30 {
      %c0_29 = arith.constant 0 : index
      %c0_30 = arith.constant 0 : index
      %c0_31 = arith.constant 0 : index
      %31 = vector.load %arg9[%c0_29, %c0_30, %c0_31] : memref<2x16x1xf32, #tpu.memory_space<vmem>>, vector<2x16x1xf32>
      %32 = tpu.reciprocal %31 {approx = true} : vector<2x16x1xf32> -> vector<2x16x1xf32>
      %33 = arith.mulf %31, %32 : vector<2x16x1xf32>
      %cst_32 = arith.constant 2.000000e+00 : f32
      %34 = vector.broadcast %cst_32 : f32 to vector<2x16x1xf32>
      %35 = arith.subf %34, %33 : vector<2x16x1xf32>
      %36 = arith.mulf %32, %35 : vector<2x16x1xf32>
      %c0_33 = arith.constant 0 : index
      %c0_34 = arith.constant 0 : index
      %37 = memref.load %arg2[%c0_33, %c0_34] : memref<1x1xf32, #tpu.memory_space<smem>>
      %c0_35 = arith.constant 0 : index
      %c0_36 = arith.constant 0 : index
      %c0_37 = arith.constant 0 : index
      %38 = vector.load %arg4[%c0_35, %c0_36, %c0_37] : memref<2x16x4xf32, #tpu.memory_space<vmem>>, vector<2x16x4xf32>
      %c0_38 = arith.constant 0 : index
      %c0_39 = arith.constant 0 : index
      %c0_40 = arith.constant 0 : index
      %39 = vector.load %arg10[%c0_38, %c0_39, %c0_40] : memref<2x16x4xf32, #tpu.memory_space<vmem>>, vector<2x16x4xf32>
      %40 = vector.broadcast %36 : vector<2x16x1xf32> to vector<2x16x4xf32>
      %41 = arith.mulf %39, %40 : vector<2x16x4xf32>
      %42 = vector.broadcast %37 : f32 to vector<2x16x4xf32>
      %43 = arith.mulf %42, %41 : vector<2x16x4xf32>
      %44 = arith.addf %38, %43 : vector<2x16x4xf32>
      %c0_41 = arith.constant 0 : index
      %c0_42 = arith.constant 0 : index
      %c0_43 = arith.constant 0 : index
      %45 = vector.load %arg6[%c0_41, %c0_42, %c0_43] : memref<2x16x4xf32, #tpu.memory_space<vmem>>, vector<2x16x4xf32>
      tpu.vector_store %arg6[%c0_41, %c0_42, %c0_43], %44 {strides = array<i32>} : memref<2x16x4xf32, #tpu.memory_space<vmem>>, vector<2x16x4xf32>,
    } else {
    }
    return
  }
  func.func @transform_0(%arg0: i32, %arg1: i32) -> (i32, i32) {
    %c0_i32 = arith.constant 0 : i32
    %c0_i32_0 = arith.constant 0 : i32
    %c0_i32_1 = arith.constant 0 : i32
    return %c0_i32, %c0_i32_0 : i32, i32
  }
  func.func @transform_1(%arg0: i32, %arg1: i32) -> (i32, i32) {
    %c0_i32 = arith.constant 0 : i32
    %c0_i32_0 = arith.constant 0 : i32
    %c0_i32_1 = arith.constant 0 : i32
    return %c0_i32, %c0_i32_0 : i32, i32
  }
  func.func @transform_2(%arg0: i32, %arg1: i32) -> (i32, i32, i32) {
    %c0_i32 = arith.constant 0 : i32
    %c0_i32_0 = arith.constant 0 : i32
    %c0_i32_1 = arith.constant 0 : i32
    return %c0_i32, %arg0, %c0_i32_0 : i32, i32, i32
  }
  func.func @transform_3(%arg0: i32, %arg1: i32) -> (i32, i32, i32) {
    %c0_i32 = arith.constant 0 : i32
    %c0_i32_0 = arith.constant 0 : i32
    %c0_i32_1 = arith.constant 0 : i32
    return %c0_i32, %arg1, %c0_i32_0 : i32, i32, i32
  }
  func.func @transform_4(%arg0: i32, %arg1: i32) -> (i32, i32, i32) {
    %c0_i32 = arith.constant 0 : i32
    %c0_i32_0 = arith.constant 0 : i32
    %c0_i32_1 = arith.constant 0 : i32
    return %c0_i32, %arg0, %c0_i32_0 : i32, i32, i32
  }
}

</mosaic_0001>

<bundles_post_ra>
// kernel: tpu_custom_call.1
= control target key start
LH: loop header
LB: loop body
LE: loop exit
PB: predicated region body
PF: predicated region fallthrough
CT: control target
= control target key end

     0   :  { %vm34_vm0 = vcmask 1043456   ;;  %vm27_vm1 = vcmask 31744   ;;  %vm198_vm3 = vcmask 7168   ;;  %v890_v19 = vmov -inf   ;;  %s1030_s1 = inlined_call_operand.vmem [shape: f32[4,4], index: 1, kind: input, shape index: {}]   ;;  %s1031_s2 = inlined_call_operand.vmem [shape: f32[2,16,4], index: 2, kind: input, shape index: {}]   ;;  %s1032_s3 = inlined_call_operand.vmem [shape: f32[2,16,4], index: 3, kind: input, shape index: {}]   ;;  %s1033_s0 = inlined_call_operand.<no memory space> [shape: f32[1,1], index: 0, kind: input, shape index: {}]   ;;  %s1034_s4 = inlined_call_operand.vmem [shape: f32[2,16,4], index: 4, kind: output, shape index: {}]  }
   0x1   :  { %v26_v0 = vld [vmem:[%s1030_s1] sm:$0xf]  ;;  %v929_v2 = vld [vmem:[%s1031_s2 + $0x8] sm:$0xff]  ;;  %v936_v3 = vld [vmem:[%s1031_s2 + $0x10] sm:$0xff]  ;;  %200 = vst.msk [vmem:[#allocation3 + $0x8] sm:$0xff] %vm198_vm3, %v890_v19  ;;  %vm398_vm4 = vcmask 130048  }
   0x2   :  { %v924_v1 = vld [vmem:[%s1031_s2] sm:$0xff]  ;;  %803 = vmatprep.subr.msk.mxu0 %vm34_vm0, %v26_v0  ;;  %808 = vmatprep.subr.msk.mxu1 %vm34_vm0, %v26_v0  ;;  %v941_v4 = vld [vmem:[%s1031_s2 + $0x18] sm:$0xff]  ;;  %v212_v6 = vld [vmem:[%s1032_s3 + $0x8] sm:$0xff]  ;;  %199 = vst.msk [vmem:[#allocation3] sm:$0xff] %vm198_vm3, %v890_v19  ;;  %v891_v28 = vmov 0   ;;  %v892_v29 = vmov 0.0  }
   0x3   :  { %805 = vmatprep.mubr.msk.f32.mxu0 %vm27_vm1, %v924_v1  ;;  %804 = vmatpush3.msk.msra.mxu0 %vm34_vm0, %v26_v0  ;;  %v211_v5 = vld [vmem:[%s1032_s3] sm:$0xff]  ;;  %v213_v8 = vld [vmem:[%s1032_s3 + $0x10] sm:$0xff]  ;;  %v214_v9 = vld [vmem:[%s1032_s3 + $0x18] sm:$0xff]  ;;  %201 = vst.msk [vmem:[#allocation3 + $0x10] sm:$0xff] %vm198_vm3, %v890_v19 }
   0x4   :  { %806 = vmatmul.mubr.msk.f32.vlgmr.msra.gmra.mrb[0].mxu0 %vm27_vm1, %v929_v2  ;;  %809 = vmatpush3.msk.msra.mxu1 %vm34_vm0, %v26_v0  ;;  %v841_v7 = vpack.c.bf16 %v212_v6, %v211_v5  ;;  %vm842_vm2 = vmpackc.low %vm27_vm1, %vm27_vm1  ;;  %v847_v10 = vpack.c.bf16 %v214_v9, %v213_v8  ;;  %202 = vst.msk [vmem:[#allocation3 + $0x18] sm:$0xff] %vm198_vm3, %v890_v19 }
   0x5   :  { %810 = vmatprep.mubr.msk.f32.mxu1 %vm27_vm1, %v936_v3  ;;  %865 = vset.pattern.permute.xlu1 %v891_v28  ;;  %204 = vst.msk [vmem:[#allocation4 + $0x8] sm:$0xff] %vm198_vm3, %v892_v29  ;;  %203 = vst.msk [vmem:[#allocation4] sm:$0xff] %vm198_vm3, %v892_v29 }
   0x6   :  { %811 = vmatmul.mubr.msk.f32.vlgmr.msra.gmra.mrb[0].mxu1 %vm27_vm1, %v941_v4  ;;  %843 = vmatprep.subr.msk.bf16.mxu0 %vm842_vm2, %v841_v7  ;;  %205 = vst.msk [vmem:[#allocation4 + $0x10] sm:$0xff] %vm198_vm3, %v892_v29  ;;  %206 = vst.msk [vmem:[#allocation4 + $0x18] sm:$0xff] %vm198_vm3, %v892_v29 }
   0x7   :  { %849 = vmatprep.subr.msk.bf16.mxu1 %vm842_vm2, %v847_v10  ;;  %864 = vset.pattern.permute.xlu0 %v891_v28  ;;  %207 = vst.msk [vmem:[#allocation5] sm:$0xff] %vm27_vm1, %v892_v29  ;;  %208 = vst.msk [vmem:[#allocation5 + $0x8] sm:$0xff] %vm27_vm1, %v892_v29 }
   0x8   :  { %209 = vst.msk [vmem:[#allocation5 + $0x10] sm:$0xff] %vm27_vm1, %v892_v29  ;;  %210 = vst.msk [vmem:[#allocation5 + $0x18] sm:$0xff] %vm27_vm1, %v892_v29  ;;  %v395_v30 = vld [vmem:[#allocation3 + $0x8] sm:$0xff] }
   0x9   :  { %v394_v31 = vld [vmem:[#allocation3] sm:$0xff] }
   0xa   :  { %846 = vmatpush3.bf16.xpose.msk.msra.mxu0 %vm842_vm2, %v841_v7  ;;  %v396_v38 = vld [vmem:[#allocation3 + $0x10] sm:$0xff] }
   0xb   :  { %852 = vmatpush3.bf16.xpose.msk.msra.mxu1 %vm842_vm2, %v847_v10  ;;  %854 = vmatprep.subr.bf16.mxu0 %v841_v7  ;;  %v397_v36 = vld [vmem:[#allocation3 + $0x18] sm:$0xff] }
   0xc   :  { %858 = vmatprep.subr.bf16.mxu1 %v847_v10 }
  0xd7   :  { %v807_v11 = vpop.f32.mrb[0].mxu0 }
  0xd8   :  { %195 = vst.msk [vmem:[#allocation2 + $0x8] sm:$0xff] %vm27_vm1, %v807_v11  ;;  %v104_v12 = vpop.f32.mrb[1].mxu0 }
  0xd9   :  { %194 = vst.msk [vmem:[#allocation2] sm:$0xff] %vm27_vm1, %v104_v12  ;;  %v812_v13 = vpop.f32.mrb[0].mxu1 }
  0xda   :  { %197 = vst.msk [vmem:[#allocation2 + $0x18] sm:$0xff] %vm27_vm1, %v812_v13  ;;  %v185_v14 = vpop.f32.mrb[1].mxu1 }
  0xdb   :  { %196 = vst.msk [vmem:[#allocation2 + $0x10] sm:$0xff] %vm27_vm1, %v185_v14  ;;  %v460_v14 = vld [vmem:[#allocation4 + $0x8] sm:$0xff] }
  0xdf   :  { %v216_v16 = vld [vmem:[#allocation2 + $0x8] sm:$0xff] }
  0xe0   :  { %v215_v15 = vld [vmem:[#allocation2] sm:$0xff] }
  0xe1   :  { %817 = vmatprep.mubr.msk.f32.mxu0 %vm27_vm1, %v215_v15  ;;  %v218_v17 = vld [vmem:[#allocation2 + $0x18] sm:$0xff]  ;;  %v459_v15 = vld [vmem:[#allocation4] sm:$0xff] }
  0xe2   :  { %818 = vmatmul.mubr.msk.f32.vlgmr.msra.gmra.mrb[2].mxu0 %vm27_vm1, %v216_v16  ;;  %v217_v18 = vld [vmem:[#allocation2 + $0x10] sm:$0xff] }
  0xe3   :  { %824 = vmatprep.mubr.msk.f32.mxu1 %vm27_vm1, %v217_v18  ;;  %856 = vmatpush3.bf16.msra.mxu0 %v841_v7 }
  0xe4   :  { %825 = vmatmul.mubr.msk.f32.vlgmr.msra.gmra.mrb[2].mxu1 %vm27_vm1, %v218_v17 }
  0xe5   :  { %860 = vmatpush3.bf16.msra.mxu1 %v847_v10 }
 0x1b5   :  { %v819_v20 = vpop.f32.mrb[2].mxu0 }
 0x1b6   :  { %v298_v21 = vpop.f32.mrb[3].mxu0  ;;  %v402_v22 = vsel %vm398_vm4, %v819_v20, -inf }
 0x1b7   :  { %v826_v23 = vpop.f32.mrb[2].mxu1  ;;  %403 = vmax.xlane.f32.xlu1 %v402_v22  ;;  %v399_v24 = vsel %vm398_vm4, %v298_v21, -inf }
 0x1b8   :  { %v385_v25 = vpop.f32.mrb[3].mxu1  ;;  %400 = vmax.xlane.f32.xlu0 %v399_v24  ;;  %v408_v26 = vsel %vm398_vm4, %v826_v23, -inf }
 0x1b9   :  { %v405_v27 = vsel %vm398_vm4, %v385_v25, -inf }
 0x1bb   :  { %409 = vmax.xlane.f32.xlu1 %v408_v26 }
 0x1bc   :  { %406 = vmax.xlane.f32.xlu0 %v405_v27 }
 0x244   :  { %v404_v32 = vpop.xlane.xlu1 %403 }
 0x245   :  { %v412_v33 = vmax.f32 %v395_v30, %v404_v32  ;;  %v401_v34 = vpop.xlane.xlu0 %400 }
 0x246   :  { %v411_v35 = vmax.f32 %v394_v31, %v401_v34 }
 0x247   :  { %v416_v37 = vsub.f32 %v395_v30, %v412_v33  ;;  %687 = vst.msk [vmem:[#allocation3 + $0x8] sm:$0xff] %vm198_vm3, %v412_v33  ;;  %434 = vperm.xlu1 %865, %v412_v33  }
 0x248   :  { %v415_v39 = vsub.f32 %v394_v31, %v411_v35  ;;  %686 = vst.msk [vmem:[#allocation3] sm:$0xff] %vm198_vm3, %v411_v35  ;;  %v410_v40 = vpop.xlane.xlu1 %409  ;;  %429 = vperm.xlu0 %864, %v411_v35  }
 0x249   :  { %v414_v41 = vmax.f32 %v397_v36, %v410_v40  ;;  %v407_v42 = vpop.xlane.xlu0 %406  ;;  %v421_v5 = vmul.f32 1.442695, %v416_v37 }
 0x24a   :  { %v413_v43 = vmax.f32 %v396_v38, %v407_v42  ;;  %v419_v7 = vmul.f32 1.442695, %v415_v39 }
 0x24b   :  { %v418_v44 = vsub.f32 %v397_v36, %v414_v41  ;;  %689 = vst.msk [vmem:[#allocation3 + $0x18] sm:$0xff] %vm198_vm3, %v414_v41 }
 0x24c   :  { %v417_v45 = vsub.f32 %v396_v38, %v413_v43  ;;  %688 = vst.msk [vmem:[#allocation3 + $0x10] sm:$0xff] %vm198_vm3, %v413_v43  ;;  %439 = vperm.xlu1 %865, %v413_v43  }
 0x24d   :  { %v425_v9 = vmul.f32 1.442695, %v418_v44 }
 0x24e   :  { %v423_v8 = vmul.f32 1.442695, %v417_v45 }
 0x250   :  { %444 = vperm.xlu1 %865, %v414_v41  }
 0x2c6   :  { %v435_v46 = vpop.permute.xlu1 %434 }
 0x2c7   :  { %v448_v47 = vsub.f32 %v819_v20, %v435_v46  ;;  %v430_v48 = vpop.permute.xlu0 %429 }
 0x2c8   :  { %v447_v49 = vsub.f32 %v298_v21, %v430_v48  ;;  %v461_v21 = vld [vmem:[#allocation4 + $0x10] sm:$0xff] }
 0x2c9   :  { %v453_v50 = vmul.f32 1.442695, %v448_v47 }
 0x2ca   :  { %v451_v51 = vmul.f32 1.442695, %v447_v49 }
 0x2cb   :  { %866 = vpow2.f32 %v453_v50  ;;  %v440_v52 = vpop.permute.xlu1 %439 }
 0x2cc   :  { %868 = vpow2.f32 %v451_v51  ;;  %v449_v53 = vsub.f32 %v385_v25, %v440_v52  ;;  %v462_v25 = vld [vmem:[#allocation4 + $0x18] sm:$0xff]  ;;  %v651_v51 = vld [vmem:[#allocation5 + $0x8] sm:$0xff] }
 0x2ce   :  { %v455_v54 = vmul.f32 1.442695, %v449_v53  ;;  %v650_v53 = vld [vmem:[#allocation5] sm:$0xff] }
 0x2cf   :  { %v445_v55 = vpop.permute.xlu1 %444 }
 0x2d0   :  { %870 = vpow2.f32 %v455_v54  ;;  %v450_v56 = vsub.f32 %v826_v23, %v445_v55 }
 0x2d2   :  { %v457_v57 = vmul.f32 1.442695, %v450_v56 }
 0x2d4   :  { %872 = vpow2.f32 %v457_v57 }
 0x2d5   :  { %v867_v58 = vpop.eup %866  ;;  %874 = vpow2.f32 %v421_v5 }
 0x2d6   :  { %v869_v59 = vpop.eup %868  ;;  %v470_v60 = vsel %vm398_vm4, %v867_v58, 0.0  ;;  %876 = vpow2.f32 %v419_v7 }
 0x2d7   :  { %471 = vadd.xlane.f32.xlu0 %v470_v60  ;;  %831 = vmatprep.mubr.msk.f32.mxu0 %vm398_vm4, %v869_v59  ;;  %v467_v61 = vsel %vm398_vm4, %v869_v59, 0.0  ;;  %878 = vpow2.f32 %v423_v8 }
 0x2d8   :  { %832 = vmatmul.mubr.msk.f32.vlgmr.msra.gmra.mrb[4].mxu0 %vm398_vm4, %v867_v58  ;;  %468 = vadd.xlane.f32.xlu1 %v467_v61  ;;  %880 = vpow2.f32 %v425_v9  ;;  %v653_v61 = vld [vmem:[#allocation5 + $0x18] sm:$0xff] }
 0x2da   :  { %v871_v62 = vpop.eup %870 }
 0x2db   :  { %838 = vmatprep.mubr.msk.f32.mxu1 %vm398_vm4, %v871_v62  ;;  %v473_v63 = vsel %vm398_vm4, %v871_v62, 0.0 }
 0x2dc   :  { %474 = vadd.xlane.f32.xlu1 %v473_v63  ;;  %v652_v63 = vld [vmem:[#allocation5 + $0x10] sm:$0xff] }
 0x2de   :  { %v873_v0 = vpop.eup %872 }
 0x2df   :  { %839 = vmatmul.mubr.msk.f32.vlgmr.msra.gmra.mrb[4].mxu1 %vm398_vm4, %v873_v0  ;;  %v476_v6 = vsel %vm398_vm4, %v873_v0, 0.0  ;;  %v875_v10 = vpop.eup %874 }
 0x2e0   :  { %477 = vadd.xlane.f32.xlu1 %v476_v6  ;;  %v877_v11 = vpop.eup %876  ;;  %v464_v16 = vmul.f32 %v875_v10, %v460_v14 }
 0x2e1   :  { %v879_v12 = vpop.eup %878  ;;  %v463_v18 = vmul.f32 %v877_v11, %v459_v15 }
 0x2e2   :  { %v881_v13 = vpop.eup %880  ;;  %v465_v23 = vmul.f32 %v879_v12, %v461_v21 }
 0x2e3   :  { %v466_v27 = vmul.f32 %v881_v13, %v462_v25 }
 0x2ed   :  { %661 = vperm.xlu0 %864, %v875_v10  }
 0x2f1   :  { %656 = vperm.xlu1 %865, %v877_v11  }
 0x2f5   :  { %666 = vperm.xlu1 %865, %v879_v12   ;;  %v746_v12 = vstv %s1033_s0 }
 0x2f9   :  { %671 = vperm.xlu1 %865, %v881_v13  }
 0x364   :  { %v472_v17 = vpop.xlane.xlu0 %471 }
 0x365   :  { %v480_v19 = vadd.f32 %v472_v17, %v464_v16  ;;  %v469_v20 = vpop.xlane.xlu1 %468 }
 0x366   :  { %v479_v22 = vadd.f32 %v469_v20, %v463_v18 }
 0x367   :  { %485 = vst.msk [vmem:[#allocation4 + $0x8] sm:$0xff] %vm198_vm3, %v480_v19 }
 0x368   :  { %484 = vst.msk [vmem:[#allocation4] sm:$0xff] %vm198_vm3, %v479_v22 }
 0x369   :  { %v475_v24 = vpop.xlane.xlu1 %474 }
 0x36a   :  { %v481_v26 = vadd.f32 %v475_v24, %v465_v23 }
 0x36c   :  { %486 = vst.msk [vmem:[#allocation4 + $0x10] sm:$0xff] %vm198_vm3, %v481_v26  ;;  %v662_v52 = vpop.permute.xlu0 %661 }
 0x36d   :  { %v478_v28 = vpop.xlane.xlu1 %477  ;;  %v675_v55 = vmul.f32 %v662_v52, %v651_v51 }
 0x36e   :  { %v482_v29 = vadd.f32 %v478_v28, %v466_v27  ;;  %v694_v30 = vld [vmem:[#allocation4 + $0x8] sm:$0xff] }
 0x36f   :  { %882 = vrcp.f32 %v694_v30  ;;  %v693_v31 = vld [vmem:[#allocation4] sm:$0xff] }
 0x370   :  { %487 = vst.msk [vmem:[#allocation4 + $0x18] sm:$0xff] %vm198_vm3, %v482_v29  ;;  %884 = vrcp.f32 %v693_v31 }
 0x371   :  { %v657_v50 = vpop.permute.xlu1 %656 }
 0x372   :  { %v674_v56 = vmul.f32 %v657_v50, %v650_v53 }
 0x373   :  { %v695_v32 = vld [vmem:[#allocation4 + $0x10] sm:$0xff] }
 0x374   :  { %886 = vrcp.f32 %v695_v32 }
 0x375   :  { %v667_v54 = vpop.permute.xlu1 %666 }
 0x376   :  { %v676_v5 = vmul.f32 %v667_v54, %v652_v63 }
 0x377   :  { %v696_v33 = vld [vmem:[#allocation4 + $0x18] sm:$0xff] }
 0x378   :  { %888 = vrcp.f32 %v696_v33 }
 0x379   :  { %v883_v34 = vpop.eup %882  ;;  %v672_v62 = vpop.permute.xlu1 %671 }
 0x37a   :  { %v885_v35 = vpop.eup %884  ;;  %v702_v36 = vmul.f32 %v883_v34, %v694_v30  ;;  %v677_v0 = vmul.f32 %v672_v62, %v653_v61 }
 0x37b   :  { %v701_v37 = vmul.f32 %v885_v35, %v693_v31 }
 0x37c   :  { %v706_v38 = vsub.f32 2.0, %v702_v36 }
 0x37d   :  { %v705_v39 = vsub.f32 2.0, %v701_v37 }
 0x37e   :  { %v887_v40 = vpop.eup %886  ;;  %v710_v41 = vmul.f32 %v883_v34, %v706_v38 }
 0x37f   :  { %v709_v42 = vmul.f32 %v885_v35, %v705_v39  ;;  %v703_v43 = vmul.f32 %v887_v40, %v695_v32 }
 0x380   :  { %729 = vperm.xlu0 %864, %v710_v41  }
 0x381   :  { %724 = vperm.xlu1 %865, %v709_v42   ;;  %v707_v44 = vsub.f32 2.0, %v703_v43 }
 0x382   :  { %v889_v45 = vpop.eup %888 }
 0x383   :  { %v711_v46 = vmul.f32 %v887_v40, %v707_v44  ;;  %v704_v47 = vmul.f32 %v889_v45, %v696_v33 }
 0x385   :  { %734 = vperm.xlu1 %865, %v711_v46   ;;  %v708_v48 = vsub.f32 2.0, %v704_v47 }
 0x387   :  { %v712_v49 = vmul.f32 %v889_v45, %v708_v48 }
 0x389   :  { %739 = vperm.xlu0 %864, %v712_v49  }
 0x3ab   :  { %v833_v57 = vpop.f32.mrb[4].mxu0 }
 0x3ac   :  { %v679_v58 = vadd.f32 %v833_v57, %v675_v55  ;;  %v560_v59 = vpop.f32.mrb[5].mxu0 }
 0x3ad   :  { %v678_v60 = vadd.f32 %v674_v56, %v560_v59 }
 0x3ae   :  { %683 = vst.msk [vmem:[#allocation5 + $0x8] sm:$0xff] %vm27_vm1, %v679_v58 }
 0x3af   :  { %682 = vst.msk [vmem:[#allocation5] sm:$0xff] %vm27_vm1, %v678_v60 }
 0x3b2   :  { %v840_v6 = vpop.f32.mrb[4].mxu1 }
 0x3b3   :  { %v681_v7 = vadd.f32 %v840_v6, %v677_v0  ;;  %v641_v8 = vpop.f32.mrb[5].mxu1 }
 0x3b4   :  { %v680_v9 = vadd.f32 %v676_v5, %v641_v8 }
 0x3b5   :  { %685 = vst.msk [vmem:[#allocation5 + $0x18] sm:$0xff] %vm27_vm1, %v681_v7  ;;  %v719_v10 = vld [vmem:[#allocation5 + $0x8] sm:$0xff] }
 0x3b6   :  { %684 = vst.msk [vmem:[#allocation5 + $0x10] sm:$0xff] %vm27_vm1, %v680_v9  ;;  %v718_v14 = vld [vmem:[#allocation5] sm:$0xff] }
 0x3bc   :  { %v721_v25 = vld [vmem:[#allocation5 + $0x18] sm:$0xff] }
 0x3bd   :  { %v720_v20 = vld [vmem:[#allocation5 + $0x10] sm:$0xff] }
 0x3ff   :  { %v730_v11 = vpop.permute.xlu0 %729 }
 0x400   :  { %v743_v13 = vmul.f32 %v730_v11, %v719_v10  ;;  %v725_v15 = vpop.permute.xlu1 %724 }
 0x401   :  { %v742_v16 = vmul.f32 %v725_v15, %v718_v14 }
 0x402   :  { %v748_v17 = vmul.f32 %v746_v12, %v743_v13 }
 0x403   :  { %v747_v18 = vmul.f32 %v746_v12, %v742_v16 }
 0x404   :  { %v752_v19 = vadd.f32 %v748_v17, %v929_v2  ;;  %v735_v21 = vpop.permute.xlu1 %734 }
 0x405   :  { %v751_v22 = vadd.f32 %v747_v18, %v924_v1  ;;  %v744_v23 = vmul.f32 %v735_v21, %v720_v20 }
 0x406   :  { %756 = vst.msk [vmem:[%s1034_s4 + $0x8] sm:$0xff] %vm27_vm1, %v752_v19 }
 0x407   :  { %755 = vst.msk [vmem:[%s1034_s4] sm:$0xff] %vm27_vm1, %v751_v22  ;;  %v749_v24 = vmul.f32 %v746_v12, %v744_v23 }
 0x408   :  { %v740_v26 = vpop.permute.xlu0 %739 }
 0x409   :  { %v753_v2 = vadd.f32 %v749_v24, %v936_v3  ;;  %v745_v27 = vmul.f32 %v740_v26, %v721_v25 }
 0x40b   :  { %757 = vst.msk [vmem:[%s1034_s4 + $0x10] sm:$0xff] %vm27_vm1, %v753_v2  ;;  %v750_v1 = vmul.f32 %v746_v12, %v745_v27 }
 0x40d   :  { %v754_v28 = vadd.f32 %v750_v1, %v941_v4 }
 0x40f   :  { %758 = vst.msk [vmem:[%s1034_s4 + $0x18] sm:$0xff] %vm27_vm1, %v754_v28 }

</bundles_post_ra>
